<compile_context>
chip_gen: v7x
topology: tpu7x:2x2x1
jax: 0.10.0
libtpu: 0.0.40
codegen_flags: <defaults>
</compile_context>

<pallas_src>
import jax
import jax.numpy as jnp
from jax.experimental import pallas as pl
from jax.experimental.pallas import tpu as pltpu

_N_SUMS = 6        # rgb_l1, norm_l1, norm_cnt(x nC), diff_norm_sum, bce_sum, valid_cnt
_LANES = 128
_N_CORES = 2       # leading "parallel" grid axis (v7x megacore; harmless on 1-TC chips)
_TILE_ROWS = 1024  # target rows (of 128 lanes) per block for the largest stream


def _cdiv(a, b):
    return -(-a // b)


def _round_up(x, m):
    return _cdiv(x, m) * m


def _loss_sums_kernel(rgb_p_ref, rgb_g_ref, nrm_ref, nrm_g_ref, nmask_ref,
                      dn_ref, m_ref, mg_ref, mv_ref, out_ref):
    """Accumulates 6 partial sums as lane-dense (1,128) rows of out_ref."""

    @pl.when(pl.program_id(1) == 0)
    def _():
        out_ref[...] = jnp.zeros_like(out_ref)

    f32 = jnp.float32

    def lane_partial(x):
        # (R,128) -> (1,128): sublane partial sum per tile; the expensive
        # cross-lane reduction is deferred to plain JAX after the kernel.
        return jnp.sum(x, axis=0, keepdims=True)

    # 0: L1(reduction='sum') on rgb
    rgb_l1 = lane_partial(
        jnp.abs(rgb_p_ref[...].astype(f32) - rgb_g_ref[...].astype(f32)))

    # 1,2: masked L1 sum on normals + (nC x) selected-row count.
    nm = nmask_ref[...].astype(f32)
    nd = jnp.where(nm > 0.0,
                   jnp.abs(nrm_ref[...].astype(f32) - nrm_g_ref[...].astype(f32)),
                   0.0)
    norm_l1 = lane_partial(nd)
    norm_cnt = lane_partial(nm)

    # 3: sum(diff_norm) (the mean's denominator is static -> divided in wrapper)
    dn_sum = lane_partial(dn_ref[...].astype(f32))

    # 4,5: masked BCE sum (per-element log clamp at -100, like nn.BCELoss)
    #      + valid count.  Two clamped logs are kept (not the single-log
    #      rewrite) so soft targets keep exact BCELoss semantics; EUP has its
    #      own issue slot and the kernel is HBM-bound, so this is free.
    mv = mv_ref[...].astype(f32)
    p = jnp.clip(m_ref[...].astype(f32), 0.0, 1.0)
    y = mg_ref[...].astype(f32)
    log_p = jnp.maximum(jnp.log(p), -100.0)
    log_1mp = jnp.maximum(jnp.log(1.0 - p), -100.0)
    bce = jnp.where(mv > 0.0, -(y * log_p + (1.0 - y) * log_1mp), 0.0)
    bce_sum = lane_partial(bce)
    mv_cnt = lane_partial(mv)

    out_ref[0] = out_ref[0] + rgb_l1
    out_ref[1] = out_ref[1] + norm_l1
    out_ref[2] = out_ref[2] + norm_cnt
    out_ref[3] = out_ref[3] + dn_sum
    out_ref[4] = out_ref[4] + bce_sum
    out_ref[5] = out_ref[5] + mv_cnt


def _prep_stream(flat, n_tiles, pad_value):
    """Pad a flat 1-D array to n_tiles * tile_rows * 128, lane-dense reshape."""
    length = max(int(flat.shape[0]), 1)
    rows = _cdiv(length, _LANES)
    tile_rows = _round_up(_cdiv(rows, n_tiles), 8)   # sublane-aligned block rows
    total = n_tiles * tile_rows * _LANES
    padded = jnp.pad(flat, (0, total - int(flat.shape[0])),
                     mode="constant", constant_values=pad_value)
    return padded.reshape(n_tiles * tile_rows, _LANES), tile_rows


def _compute_sums(streams, pad_values):
    """One row-tiled pallas_call producing the 6 global reductions."""
    lengths = [max(int(s.shape[0]), 1) for s in streams]
    max_rows = max(_cdiv(length, _LANES) for length in lengths)
    n_tiles = _round_up(max(_cdiv(max_rows, _TILE_ROWS), 1), _N_CORES)
    n_inner = n_tiles // _N_CORES

    padded, in_specs = [], []

    def in_index(c, i):
        return (c * n_inner + i, 0)

    for s, pv in zip(streams, pad_values):
        arr, tile_rows = _prep_stream(s, n_tiles, pv)
        padded.append(arr)
        in_specs.append(pl.BlockSpec((tile_rows, _LANES), in_index))

    out = pl.pallas_call(
        _loss_sums_kernel,
        out_shape=jax.ShapeDtypeStruct((_N_CORES * _N_SUMS, 1, _LANES),
                                       jnp.float32),
        grid=(_N_CORES, n_inner),
        in_specs=in_specs,
        out_specs=pl.BlockSpec((_N_SUMS, 1, _LANES), lambda c, i: (c, 0, 0)),
        compiler_params=pltpu.CompilerParams(
            dimension_semantics=("parallel", "arbitrary"),
            vmem_limit_bytes=32 * 1024 * 1024),
    )(*padded)

    # Final cross-core + cross-lane reduction (tiny), done in plain JAX.
    return out.reshape(_N_CORES, _N_SUMS, _LANES).sum(axis=(0, 2))


class PallasLoss:
    """JAX/Pallas port of the PyTorch `Loss` module (forward pass only)."""

    def __init__(self, full_weight, grad_weight, norm_weight=1.0, mask_weight=1.0):
        self.full_weight = float(full_weight)
        self.grad_weight = float(grad_weight)
        self.norm_weight = float(norm_weight)
        self.mask_weight = float(mask_weight)

    def __call__(self, out_dict, rgb_gt, normal_gt=None, norm_mask=None,
                 mask=None, mask_gt=None, mask_valid=None):
        rgb_pred = out_dict['rgb']
        diff_norm = out_dict['diff_norm']
        normal = out_dict.get('normal_pred', None)

        f32 = jnp.float32

        # Flatten (native dtype is kept; casts to f32 happen inside the kernel).
        rgb_p = rgb_pred.reshape(-1)
        rgb_g = rgb_gt.reshape(-1)

        have_dn = diff_norm is not None and diff_norm.size > 0
        dn = diff_norm.reshape(-1) if have_dn else jnp.zeros((1,), f32)

        have_normal = normal is not None and normal_gt is not None
        if have_normal:
            nrm = normal.reshape(-1)
            nrm_g = normal_gt.reshape(-1)
            nm = jnp.broadcast_to(norm_mask[..., None],
                                  normal.shape).astype(normal.dtype).reshape(-1)
        else:
            nrm = jnp.zeros((1,), f32)
            nrm_g = jnp.zeros((1,), f32)
            nm = jnp.zeros((1,), f32)

        have_mask = mask is not None and mask_gt is not None
        if have_mask:
            m = mask.reshape(-1)
            mg = mask_gt.reshape(-1)
            mv = mask_valid.astype(mask.dtype).reshape(-1)
        else:
            m = jnp.full((1,), 0.5, f32)
            mg = jnp.zeros((1,), f32)
            mv = jnp.zeros((1,), f32)

        streams = [rgb_p, rgb_g, nrm, nrm_g, nm, dn, m, mg, mv]
        # Padding: masks/targets pad with 0 (contributions vanish), mask
        # probabilities pad with 0.5 (finite log, masked out anyway).
        pad_values = [0.0, 0.0, 0.0, 0.0, 0.0, 0.0, 0.5, 0.0, 0.0]

        sums = _compute_sums(streams, pad_values)
        rgb_l1, norm_l1, norm_cnt3, dn_sum, bce_sum, mv_cnt = (
            sums[i] for i in range(_N_SUMS))

        if self.full_weight != 0.0:
            rgb_full_loss = rgb_l1 / float(rgb_pred.shape[1])
        else:
            rgb_full_loss = jnp.asarray(0.0, f32)

        if have_dn and self.grad_weight != 0.0:
            grad_loss = dn_sum / float(diff_norm.size)
        else:
            grad_loss = jnp.asarray(0.0, f32)

        loss = self.full_weight * rgb_full_loss + self.grad_weight * grad_loss
        loss_term = {'fullrgb_loss': rgb_full_loss, 'grad_loss': grad_loss}

        if have_normal:
            n_sel_rows = norm_cnt3 / float(normal.shape[-1])   # mask counted per channel
            normal_loss = norm_l1 / jnp.maximum(n_sel_rows, 1.0)
            loss = loss + jnp.where(n_sel_rows > 0.0,
                                    self.norm_weight * normal_loss, 0.0)
            loss_term['normal_loss'] = normal_loss

        if have_mask:
            # NaN if there are no valid entries, matching torch's mean-over-empty.
            lmask = bce_sum / mv_cnt
            loss = loss + self.mask_weight * lmask
            loss_term['mask_loss'] = lmask

        loss_term['loss'] = loss
        return loss_term


def _reference_loss(rgb_pred, rgb_gt, diff_norm, normal, normal_gt, norm_mask,
                    mask, mask_gt, mask_valid, fw, gw, nw, mw):
    rgb_full = jnp.sum(jnp.abs(rgb_pred - rgb_gt)) / float(rgb_pred.shape[1])
    grad = jnp.mean(diff_norm)
    sel3 = norm_mask[..., None]
    normal_loss = (jnp.sum(jnp.where(sel3, jnp.abs(normal - normal_gt), 0.0))
                   / jnp.sum(norm_mask))
    p = jnp.clip(mask, 0.0, 1.0)
    bce = -(mask_gt * jnp.maximum(jnp.log(p), -100.0)
            + (1.0 - mask_gt) * jnp.maximum(jnp.log(1.0 - p), -100.0))
    lmask = jnp.sum(jnp.where(mask_valid, bce, 0.0)) / jnp.sum(mask_valid)
    return fw * rgb_full + gw * grad + nw * normal_loss + mw * lmask


if __name__ == "__main__":
    key = jax.random.PRNGKey(0)
    ks = jax.random.split(key, 9)
    B, N, C = 2, 16, 3

    rgb_pred = jax.random.uniform(ks[0], (B, N, C), dtype=jnp.float32)
    rgb_gt = jax.random.uniform(ks[1], (B, N, C), dtype=jnp.float32)
    diff_norm = jax.random.uniform(ks[2], (B, N), dtype=jnp.float32)
    normal_pred = jax.random.normal(ks[3], (B, N, C), dtype=jnp.float32)
    normal_gt = jax.random.normal(ks[4], (B, N, C), dtype=jnp.float32)
    norm_mask = jax.random.uniform(ks[5], (B, N)) > 0.5
    norm_mask = norm_mask.at[0, 0].set(True)     # guarantee non-empty selection
    mask = jax.random.uniform(ks[6], (B, N), dtype=jnp.float32)
    mask_gt = (jax.random.uniform(ks[7], (B, N)) > 0.5).astype(jnp.float32)
    mask_valid = jax.random.uniform(ks[8], (B, N)) > 0.3
    mask_valid = mask_valid.at[0, 0].set(True)

    fw, gw, nw, mw = 1.0, 0.1, 1.0, 1.0
    loss_fn = PallasLoss(full_weight=fw, grad_weight=gw,
                         norm_weight=nw, mask_weight=mw)

    out = loss_fn({'rgb': rgb_pred, 'diff_norm': diff_norm,
                   'normal_pred': normal_pred},
                  rgb_gt, normal_gt=normal_gt, norm_mask=norm_mask,
                  mask=mask, mask_gt=mask_gt, mask_valid=mask_valid)
    jax.block_until_ready(out['loss'])

    ref = _reference_loss(rgb_pred, rgb_gt, diff_norm, normal_pred, normal_gt,
                          norm_mask, mask, mask_gt, mask_valid, fw, gw, nw, mw)
    assert jnp.allclose(out['loss'], ref, rtol=1e-4, atol=1e-5), (out['loss'], ref)

    print("KERNEL_OK")
</pallas_src>

<mosaic_0001>
module attributes {stable_mosaic.version = 11 : i64} {
  func.func @_loss_sums_kernel(%arg0: i32, %arg1: i32, %arg2: memref<8x128xf32, #tpu.memory_space<vmem>>, %arg3: memref<8x128xf32, #tpu.memory_space<vmem>>, %arg4: memref<8x128xf32, #tpu.memory_space<vmem>>, %arg5: memref<8x128xf32, #tpu.memory_space<vmem>>, %arg6: memref<8x128xf32, #tpu.memory_space<vmem>>, %arg7: memref<8x128xf32, #tpu.memory_space<vmem>>, %arg8: memref<8x128xf32, #tpu.memory_space<vmem>>, %arg9: memref<8x128xf32, #tpu.memory_space<vmem>>, %arg10: memref<8x128xf32, #tpu.memory_space<vmem>>, %arg11: memref<6x1x128xf32, #tpu.memory_space<vmem>>) attributes {dimension_semantics = [#tpu.dimension_semantics<parallel>, #tpu.dimension_semantics<arbitrary>], iteration_bounds = array<i64: 2, 1>, scalar_prefetch = 0 : i64, scratch_operands = 0 : i64, tpu.core_type = #tpu.core_type<tc>, window_params = [{transform_indices = @transform_0, window_bounds = array<i64: 8, 128>}, {transform_indices = @transform_1, window_bounds = array<i64: 8, 128>}, {transform_indices = @transform_2, window_bounds = array<i64: 8, 128>}, {transform_indices = @transform_3, window_bounds = array<i64: 8, 128>}, {transform_indices = @transform_4, window_bounds = array<i64: 8, 128>}, {transform_indices = @transform_5, window_bounds = array<i64: 8, 128>}, {transform_indices = @transform_6, window_bounds = array<i64: 8, 128>}, {transform_indices = @transform_7, window_bounds = array<i64: 8, 128>}, {transform_indices = @transform_8, window_bounds = array<i64: 8, 128>}, {transform_indices = @transform_9, window_bounds = array<i64: 6, 1, 128>}]} {
    %c0_i32 = arith.constant 0 : i32
    %0 = arith.cmpi eq, %arg1, %c0_i32 : i32
    %1 = arith.extui %0 : i1 to i32
    %c0_i32_0 = arith.constant 0 : i32
    %2 = arith.cmpi ne, %1, %c0_i32_0 : i32
    scf.if %2 {
      %cst_65 = arith.constant 0.000000e+00 : f32
      %91 = vector.broadcast %cst_65 : f32 to vector<6x1x128xf32>
      %c0_66 = arith.constant 0 : index
      %c0_67 = arith.constant 0 : index
      %c0_68 = arith.constant 0 : index
      %92 = vector.load %arg11[%c0_66, %c0_67, %c0_68] : memref<6x1x128xf32, #tpu.memory_space<vmem>>, vector<6x1x128xf32>
      tpu.vector_store %arg11[%c0_66, %c0_67, %c0_68], %91 {strides = array<i32>} : memref<6x1x128xf32, #tpu.memory_space<vmem>>, vector<6x1x128xf32>,
    } else {
    }
    %c0 = arith.constant 0 : index
    %c0_1 = arith.constant 0 : index
    %3 = vector.load %arg2[%c0, %c0_1] : memref<8x128xf32, #tpu.memory_space<vmem>>, vector<8x128xf32>
    %c0_2 = arith.constant 0 : index
    %c0_3 = arith.constant 0 : index
    %4 = vector.load %arg3[%c0_2, %c0_3] : memref<8x128xf32, #tpu.memory_space<vmem>>, vector<8x128xf32>
    %5 = arith.subf %3, %4 : vector<8x128xf32>
    %6 = math.absf %5 : vector<8x128xf32>
    %cst = arith.constant dense<0.000000e+00> : vector<128xf32>
    %7 = vector.multi_reduction <add>, %6, %cst [0] : vector<8x128xf32> to vector<128xf32>
    %8 = vector.shape_cast %7 : vector<128xf32> to vector<1x128xf32>
    %c0_4 = arith.constant 0 : index
    %c0_5 = arith.constant 0 : index
    %9 = vector.load %arg6[%c0_4, %c0_5] : memref<8x128xf32, #tpu.memory_space<vmem>>, vector<8x128xf32>
    %cst_6 = arith.constant 0.000000e+00 : f32
    %10 = vector.broadcast %cst_6 : f32 to vector<8x128xf32>
    %11 = arith.cmpf ogt, %9, %10 : vector<8x128xf32>
    %c0_7 = arith.constant 0 : index
    %c0_8 = arith.constant 0 : index
    %12 = vector.load %arg4[%c0_7, %c0_8] : memref<8x128xf32, #tpu.memory_space<vmem>>, vector<8x128xf32>
    %c0_9 = arith.constant 0 : index
    %c0_10 = arith.constant 0 : index
    %13 = vector.load %arg5[%c0_9, %c0_10] : memref<8x128xf32, #tpu.memory_space<vmem>>, vector<8x128xf32>
    %14 = arith.subf %12, %13 : vector<8x128xf32>
    %15 = math.absf %14 : vector<8x128xf32>
    %cst_11 = arith.constant 0.000000e+00 : f32
    %16 = vector.broadcast %cst_11 : f32 to vector<8x128xf32>
    %17 = arith.select %11, %15, %16 : vector<8x128xi1>, vector<8x128xf32>
    %cst_12 = arith.constant dense<0.000000e+00> : vector<128xf32>
    %18 = vector.multi_reduction <add>, %17, %cst_12 [0] : vector<8x128xf32> to vector<128xf32>
    %19 = vector.shape_cast %18 : vector<128xf32> to vector<1x128xf32>
    %cst_13 = arith.constant dense<0.000000e+00> : vector<128xf32>
    %20 = vector.multi_reduction <add>, %9, %cst_13 [0] : vector<8x128xf32> to vector<128xf32>
    %21 = vector.shape_cast %20 : vector<128xf32> to vector<1x128xf32>
    %c0_14 = arith.constant 0 : index
    %c0_15 = arith.constant 0 : index
    %22 = vector.load %arg7[%c0_14, %c0_15] : memref<8x128xf32, #tpu.memory_space<vmem>>, vector<8x128xf32>
    %cst_16 = arith.constant dense<0.000000e+00> : vector<128xf32>
    %23 = vector.multi_reduction <add>, %22, %cst_16 [0] : vector<8x128xf32> to vector<128xf32>
    %24 = vector.shape_cast %23 : vector<128xf32> to vector<1x128xf32>
    %c0_17 = arith.constant 0 : index
    %c0_18 = arith.constant 0 : index
    %25 = vector.load %arg10[%c0_17, %c0_18] : memref<8x128xf32, #tpu.memory_space<vmem>>, vector<8x128xf32>
    %c0_19 = arith.constant 0 : index
    %c0_20 = arith.constant 0 : index
    %26 = vector.load %arg8[%c0_19, %c0_20] : memref<8x128xf32, #tpu.memory_space<vmem>>, vector<8x128xf32>
    %cst_21 = arith.constant 0.000000e+00 : f32
    %cst_22 = arith.constant 1.000000e+00 : f32
    %27 = vector.broadcast %cst_21 : f32 to vector<8x128xf32>
    %28 = arith.maximumf %27, %26 : vector<8x128xf32>
    %29 = vector.broadcast %cst_22 : f32 to vector<8x128xf32>
    %30 = arith.minimumf %29, %28 : vector<8x128xf32>
    %c0_23 = arith.constant 0 : index
    %c0_24 = arith.constant 0 : index
    %31 = vector.load %arg9[%c0_23, %c0_24] : memref<8x128xf32, #tpu.memory_space<vmem>>, vector<8x128xf32>
    %32 = math.log %30 : vector<8x128xf32>
    %cst_25 = arith.constant -1.000000e+02 : f32
    %33 = vector.broadcast %cst_25 : f32 to vector<8x128xf32>
    %34 = arith.maximumf %32, %33 : vector<8x128xf32>
    %cst_26 = arith.constant 1.000000e+00 : f32
    %35 = vector.broadcast %cst_26 : f32 to vector<8x128xf32>
    %36 = arith.subf %35, %30 : vector<8x128xf32>
    %37 = math.log %36 : vector<8x128xf32>
    %cst_27 = arith.constant -1.000000e+02 : f32
    %38 = vector.broadcast %cst_27 : f32 to vector<8x128xf32>
    %39 = arith.maximumf %37, %38 : vector<8x128xf32>
    %cst_28 = arith.constant 0.000000e+00 : f32
    %40 = vector.broadcast %cst_28 : f32 to vector<8x128xf32>
    %41 = arith.cmpf ogt, %25, %40 : vector<8x128xf32>
    %42 = arith.mulf %31, %34 : vector<8x128xf32>
    %cst_29 = arith.constant 1.000000e+00 : f32
    %43 = vector.broadcast %cst_29 : f32 to vector<8x128xf32>
    %44 = arith.subf %43, %31 : vector<8x128xf32>
    %45 = arith.mulf %44, %39 : vector<8x128xf32>
    %46 = arith.addf %42, %45 : vector<8x128xf32>
    %cst_30 = arith.constant 0.000000e+00 : f32
    %47 = vector.broadcast %cst_30 : f32 to vector<8x128xf32>
    %48 = arith.subf %47, %46 : vector<8x128xf32>
    %cst_31 = arith.constant 0.000000e+00 : f32
    %49 = vector.broadcast %cst_31 : f32 to vector<8x128xf32>
    %50 = arith.select %41, %48, %49 : vector<8x128xi1>, vector<8x128xf32>
    %cst_32 = arith.constant dense<0.000000e+00> : vector<128xf32>
    %51 = vector.multi_reduction <add>, %50, %cst_32 [0] : vector<8x128xf32> to vector<128xf32>
    %52 = vector.shape_cast %51 : vector<128xf32> to vector<1x128xf32>
    %cst_33 = arith.constant dense<0.000000e+00> : vector<128xf32>
    %53 = vector.multi_reduction <add>, %25, %cst_33 [0] : vector<8x128xf32> to vector<128xf32>
    %54 = vector.shape_cast %53 : vector<128xf32> to vector<1x128xf32>
    %c0_34 = arith.constant 0 : index
    %c0_35 = arith.constant 0 : index
    %c0_36 = arith.constant 0 : index
    %55 = vector.load %arg11[%c0_34, %c0_35, %c0_36] : memref<6x1x128xf32, #tpu.memory_space<vmem>>, vector<1x1x128xf32>
    %56 = vector.shape_cast %55 : vector<1x1x128xf32> to vector<1x128xf32>
    %57 = arith.addf %56, %8 : vector<1x128xf32>
    %c0_37 = arith.constant 0 : index
    %c0_38 = arith.constant 0 : index
    %c0_39 = arith.constant 0 : index
    %58 = vector.load %arg11[%c0_37, %c0_38, %c0_39] : memref<6x1x128xf32, #tpu.memory_space<vmem>>, vector<1x1x128xf32>
    %59 = vector.shape_cast %58 : vector<1x1x128xf32> to vector<1x128xf32>
    %60 = vector.shape_cast %57 : vector<1x128xf32> to vector<1x1x128xf32>
    tpu.vector_store %arg11[%c0_37, %c0_38, %c0_39], %60 {strides = array<i32>} : memref<6x1x128xf32, #tpu.memory_space<vmem>>, vector<1x1x128xf32>,
    %c1 = arith.constant 1 : index
    %c0_40 = arith.constant 0 : index
    %c0_41 = arith.constant 0 : index
    %61 = vector.load %arg11[%c1, %c0_40, %c0_41] : memref<6x1x128xf32, #tpu.memory_space<vmem>>, vector<1x1x128xf32>
    %62 = vector.shape_cast %61 : vector<1x1x128xf32> to vector<1x128xf32>
    %63 = arith.addf %62, %19 : vector<1x128xf32>
    %c1_42 = arith.constant 1 : index
    %c0_43 = arith.constant 0 : index
    %c0_44 = arith.constant 0 : index
    %64 = vector.load %arg11[%c1_42, %c0_43, %c0_44] : memref<6x1x128xf32, #tpu.memory_space<vmem>>, vector<1x1x128xf32>
    %65 = vector.shape_cast %64 : vector<1x1x128xf32> to vector<1x128xf32>
    %66 = vector.shape_cast %63 : vector<1x128xf32> to vector<1x1x128xf32>
    tpu.vector_store %arg11[%c1_42, %c0_43, %c0_44], %66 {strides = array<i32>} : memref<6x1x128xf32, #tpu.memory_space<vmem>>, vector<1x1x128xf32>,
    %c2 = arith.constant 2 : index
    %c0_45 = arith.constant 0 : index
    %c0_46 = arith.constant 0 : index
    %67 = vector.load %arg11[%c2, %c0_45, %c0_46] : memref<6x1x128xf32, #tpu.memory_space<vmem>>, vector<1x1x128xf32>
    %68 = vector.shape_cast %67 : vector<1x1x128xf32> to vector<1x128xf32>
    %69 = arith.addf %68, %21 : vector<1x128xf32>
    %c2_47 = arith.constant 2 : index
    %c0_48 = arith.constant 0 : index
    %c0_49 = arith.constant 0 : index
    %70 = vector.load %arg11[%c2_47, %c0_48, %c0_49] : memref<6x1x128xf32, #tpu.memory_space<vmem>>, vector<1x1x128xf32>
    %71 = vector.shape_cast %70 : vector<1x1x128xf32> to vector<1x128xf32>
    %72 = vector.shape_cast %69 : vector<1x128xf32> to vector<1x1x128xf32>
    tpu.vector_store %arg11[%c2_47, %c0_48, %c0_49], %72 {strides = array<i32>} : memref<6x1x128xf32, #tpu.memory_space<vmem>>, vector<1x1x128xf32>,
    %c3 = arith.constant 3 : index
    %c0_50 = arith.constant 0 : index
    %c0_51 = arith.constant 0 : index
    %73 = vector.load %arg11[%c3, %c0_50, %c0_51] : memref<6x1x128xf32, #tpu.memory_space<vmem>>, vector<1x1x128xf32>
    %74 = vector.shape_cast %73 : vector<1x1x128xf32> to vector<1x128xf32>
    %75 = arith.addf %74, %24 : vector<1x128xf32>
    %c3_52 = arith.constant 3 : index
    %c0_53 = arith.constant 0 : index
    %c0_54 = arith.constant 0 : index
    %76 = vector.load %arg11[%c3_52, %c0_53, %c0_54] : memref<6x1x128xf32, #tpu.memory_space<vmem>>, vector<1x1x128xf32>
    %77 = vector.shape_cast %76 : vector<1x1x128xf32> to vector<1x128xf32>
    %78 = vector.shape_cast %75 : vector<1x128xf32> to vector<1x1x128xf32>
    tpu.vector_store %arg11[%c3_52, %c0_53, %c0_54], %78 {strides = array<i32>} : memref<6x1x128xf32, #tpu.memory_space<vmem>>, vector<1x1x128xf32>,
    %c4 = arith.constant 4 : index
    %c0_55 = arith.constant 0 : index
    %c0_56 = arith.constant 0 : index
    %79 = vector.load %arg11[%c4, %c0_55, %c0_56] : memref<6x1x128xf32, #tpu.memory_space<vmem>>, vector<1x1x128xf32>
    %80 = vector.shape_cast %79 : vector<1x1x128xf32> to vector<1x128xf32>
    %81 = arith.addf %80, %52 : vector<1x128xf32>
    %c4_57 = arith.constant 4 : index
    %c0_58 = arith.constant 0 : index
    %c0_59 = arith.constant 0 : index
    %82 = vector.load %arg11[%c4_57, %c0_58, %c0_59] : memref<6x1x128xf32, #tpu.memory_space<vmem>>, vector<1x1x128xf32>
    %83 = vector.shape_cast %82 : vector<1x1x128xf32> to vector<1x128xf32>
    %84 = vector.shape_cast %81 : vector<1x128xf32> to vector<1x1x128xf32>
    tpu.vector_store %arg11[%c4_57, %c0_58, %c0_59], %84 {strides = array<i32>} : memref<6x1x128xf32, #tpu.memory_space<vmem>>, vector<1x1x128xf32>,
    %c5 = arith.constant 5 : index
    %c0_60 = arith.constant 0 : index
    %c0_61 = arith.constant 0 : index
    %85 = vector.load %arg11[%c5, %c0_60, %c0_61] : memref<6x1x128xf32, #tpu.memory_space<vmem>>, vector<1x1x128xf32>
    %86 = vector.shape_cast %85 : vector<1x1x128xf32> to vector<1x128xf32>
    %87 = arith.addf %86, %54 : vector<1x128xf32>
    %c5_62 = arith.constant 5 : index
    %c0_63 = arith.constant 0 : index
    %c0_64 = arith.constant 0 : index
    %88 = vector.load %arg11[%c5_62, %c0_63, %c0_64] : memref<6x1x128xf32, #tpu.memory_space<vmem>>, vector<1x1x128xf32>
    %89 = vector.shape_cast %88 : vector<1x1x128xf32> to vector<1x128xf32>
    %90 = vector.shape_cast %87 : vector<1x128xf32> to vector<1x1x128xf32>
    tpu.vector_store %arg11[%c5_62, %c0_63, %c0_64], %90 {strides = array<i32>} : memref<6x1x128xf32, #tpu.memory_space<vmem>>, vector<1x1x128xf32>,
    return
  }
  func.func @transform_0(%arg0: i32, %arg1: i32) -> (i32, i32) {
    %c1_i32 = arith.constant 1 : i32
    %0 = arith.muli %arg0, %c1_i32 : i32
    %1 = arith.addi %0, %arg1 : i32
    %c0_i32 = arith.constant 0 : i32
    %c0_i32_0 = arith.constant 0 : i32
    return %1, %c0_i32 : i32, i32
  }
  func.func @transform_1(%arg0: i32, %arg1: i32) -> (i32, i32) {
    %c1_i32 = arith.constant 1 : i32
    %0 = arith.muli %arg0, %c1_i32 : i32
    %1 = arith.addi %0, %arg1 : i32
    %c0_i32 = arith.constant 0 : i32
    %c0_i32_0 = arith.constant 0 : i32
    return %1, %c0_i32 : i32, i32
  }
  func.func @transform_2(%arg0: i32, %arg1: i32) -> (i32, i32) {
    %c1_i32 = arith.constant 1 : i32
    %0 = arith.muli %arg0, %c1_i32 : i32
    %1 = arith.addi %0, %arg1 : i32
    %c0_i32 = arith.constant 0 : i32
    %c0_i32_0 = arith.constant 0 : i32
    return %1, %c0_i32 : i32, i32
  }
  func.func @transform_3(%arg0: i32, %arg1: i32) -> (i32, i32) {
    %c1_i32 = arith.constant 1 : i32
    %0 = arith.muli %arg0, %c1_i32 : i32
    %1 = arith.addi %0, %arg1 : i32
    %c0_i32 = arith.constant 0 : i32
    %c0_i32_0 = arith.constant 0 : i32
    return %1, %c0_i32 : i32, i32
  }
  func.func @transform_4(%arg0: i32, %arg1: i32) -> (i32, i32) {
    %c1_i32 = arith.constant 1 : i32
    %0 = arith.muli %arg0, %c1_i32 : i32
    %1 = arith.addi %0, %arg1 : i32
    %c0_i32 = arith.constant 0 : i32
    %c0_i32_0 = arith.constant 0 : i32
    return %1, %c0_i32 : i32, i32
  }
  func.func @transform_5(%arg0: i32, %arg1: i32) -> (i32, i32) {
    %c1_i32 = arith.constant 1 : i32
    %0 = arith.muli %arg0, %c1_i32 : i32
    %1 = arith.addi %0, %arg1 : i32
    %c0_i32 = arith.constant 0 : i32
    %c0_i32_0 = arith.constant 0 : i32
    return %1, %c0_i32 : i32, i32
  }
  func.func @transform_6(%arg0: i32, %arg1: i32) -> (i32, i32) {
    %c1_i32 = arith.constant 1 : i32
    %0 = arith.muli %arg0, %c1_i32 : i32
    %1 = arith.addi %0, %arg1 : i32
    %c0_i32 = arith.constant 0 : i32
    %c0_i32_0 = arith.constant 0 : i32
    return %1, %c0_i32 : i32, i32
  }
  func.func @transform_7(%arg0: i32, %arg1: i32) -> (i32, i32) {
    %c1_i32 = arith.constant 1 : i32
    %0 = arith.muli %arg0, %c1_i32 : i32
    %1 = arith.addi %0, %arg1 : i32
    %c0_i32 = arith.constant 0 : i32
    %c0_i32_0 = arith.constant 0 : i32
    return %1, %c0_i32 : i32, i32
  }
  func.func @transform_8(%arg0: i32, %arg1: i32) -> (i32, i32) {
    %c1_i32 = arith.constant 1 : i32
    %0 = arith.muli %arg0, %c1_i32 : i32
    %1 = arith.addi %0, %arg1 : i32
    %c0_i32 = arith.constant 0 : i32
    %c0_i32_0 = arith.constant 0 : i32
    return %1, %c0_i32 : i32, i32
  }
  func.func @transform_9(%arg0: i32, %arg1: i32) -> (i32, i32, i32) {
    %c0_i32 = arith.constant 0 : i32
    %c0_i32_0 = arith.constant 0 : i32
    %c0_i32_1 = arith.constant 0 : i32
    return %arg0, %c0_i32, %c0_i32_0 : i32, i32, i32
  }
}

</mosaic_0001>

<bundles_post_ra>
// kernel: tpu_custom_call.1
= control target key start
LH: loop header
LB: loop body
LE: loop exit
PB: predicated region body
PF: predicated region fallthrough
CT: control target
= control target key end

     0   :  { %s2043_s0 = inlined_call_operand.hbm [shape: f32[16,128], index: 0, kind: input, shape index: {}]   ;;  %s2044_s1 = inlined_call_operand.hbm [shape: f32[16,128], index: 1, kind: input, shape index: {}]   ;;  %s2045_s2 = inlined_call_operand.hbm [shape: f32[16,128], index: 2, kind: input, shape index: {}]   ;;  %s2046_s3 = inlined_call_operand.hbm [shape: f32[16,128], index: 3, kind: input, shape index: {}]   ;;  %s2047_s4 = inlined_call_operand.hbm [shape: f32[16,128], index: 4, kind: input, shape index: {}]   ;;  %s2048_s5 = inlined_call_operand.vmem [shape: f32[16,128], index: 5, kind: input, shape index: {}]   ;;  %s2049_s6 = inlined_call_operand.hbm [shape: f32[16,128], index: 6, kind: input, shape index: {}]   ;;  %s2050_s7 = inlined_call_operand.hbm [shape: f32[16,128], index: 7, kind: input, shape index: {}]   ;;  %s2051_s8 = inlined_call_operand.hbm [shape: f32[16,128], index: 8, kind: input, shape index: {}]   ;;  %s2052_s9 = inlined_call_operand.hbm [shape: f32[12,1,128], index: 9, kind: output, shape index: {}]  }
   0x1   :  { %2068 = sst [smem:[#allocation31_spill]] %s2043_s0 }
   0x2   :  { %2069 = sst [smem:[#allocation32_spill]] %s2044_s1 }
   0x3   :  { %2070 = sst [smem:[#allocation33_spill]] %s2046_s3 }
   0x4   :  { %2071 = sst [smem:[#allocation34_spill]] %s2049_s6 }
   0x5   :  { %2072 = sst [smem:[#allocation35_spill]] %s2052_s9 }
   0x6   :  { %14 = vsyncpa [#allocation3], 0 }
   0x7   :  { %16 = vsyncpa [#allocation3 + $0x1], 0 }
   0x8   :  { %17 = vsyncpa [#allocation6], 0 }
   0x9   :  { %19 = vsyncpa [#allocation6 + $0x1], 0 }
   0xa   :  { %20 = vsyncpa [#allocation9], 0 }
   0xb   :  { %22 = vsyncpa [#allocation9 + $0x1], 0 }
   0xc   :  { %23 = vsyncpa [#allocation12], 0 }
   0xd   :  { %25 = vsyncpa [#allocation12 + $0x1], 0 }
   0xe   :  { %26 = vsyncpa [#allocation15], 0 }
   0xf   :  { %28 = vsyncpa [#allocation15 + $0x1], 0 }
  0x10   :  { %29 = vsyncpa [#allocation4], 0 }
  0x11   :  { %31 = vsyncpa [#allocation4 + $0x1], 0  ;;  %s1585_s30 = smov 0   ;;  %s1587_s10 = smov 0  }
  0x12   :  { %s1589_s11 = smov 0   ;;  %s1591_s12 = smov 0  }
  0x13   :  { %s1593_s13 = smov 0   ;;  %s1595_s14 = smov 0  }
  0x14 LB: > { %2073 = sst [smem:[#allocation23_spill]] %s1501_s30  ;;  %s1616_s15 = sadd.s32 4294967295, %s1521_s14   ;;  %s1521_s14 = sphi %s1595_s14, %s37_s14   ;;  %s1517_s13 = sphi %s1593_s13, %s2120_s13   ;;  %s1513_s12 = sphi %s1591_s12, %s2119_s12   ;;  %s1509_s11 = sphi %s1589_s11, %s2118_s11   ;;  %s1505_s10 = sphi %s1587_s10, %s2122_s10   ;;  %s1501_s30 = sphi %s1585_s30, %s2121_s30  }
  0x15   : > { %2074 = sst [smem:[#allocation24_spill]] %s1509_s11  ;;  %s1035_s16 = sadd.s32 4294967294, %s1521_s14  }
  0x16   : > { %2075 = sst [smem:[#allocation25_spill]] %s1517_s13  ;;  %s49_s17 = sadd.s32 1, %s1517_s13 }
  0x17   : > { %2076 = sst [smem:[#allocation26_spill]] %s1521_s14  ;;  %s58_s18 = sadd.s32 1, %s1509_s11 }
  0x18   : > { %p51_p0 = scmp.ge.s32.totalorder %s49_s17, 2  ;;  %p65_p1 = scmp.ne.s32.totalorder %s1509_s11, %s1505_s10 }
  0x19   : > { %p66_p2 = scmp.eq.s32.totalorder %s1521_s14, 0  ;;  %p71_p3 = scmp.ne.s32.totalorder %s1505_s10, %s1501_s30 }
  0x1a   : > { %s2124_s17 = smov (%p51_p0, %s49_s17), 0  ;;  %p72_p5 = scmp.eq.s32.totalorder %s1616_s15, 0 }
  0x1b   : > { %2077 = sst [smem:[#allocation27_spill]] %s2124_s17  ;;  %p1628_p4 = por %p66_p2, %p65_p1 }
  0x1c   : > { %s55_s20 = ssub.s32 %s1517_s13, %s2124_s17  ;;  %p319_p6 = scmp.eq.s32.totalorder %s1616_s15, 1 }
  0x1d   : > { %p56_p7 = scmp.eq.s32.totalorder %s55_s20, 0  ;;  %p1636_p8 = por %p72_p5, %p71_p3 }
  0x1e   : > { %p1640_p9 = por %p319_p6, %p65_p1  ;;  %p325_p10 = scmp.eq.s32.totalorder %s1035_s16, 1 }
  0x1f   : > { %s2079_s21 = scalar_select %p1636_p8, 1, 0 }
  0x20   : > { %s2080_s22 = scalar_select %p1640_p9, 1, 0 }
  0x21   : > { %s1645_s23 = scalar_select %p56_p7, %s1509_s11, %s58_s18  }
  0x22   : > { %2081 = sst [smem:[#allocation28_spill]] %s2080_s22  ;;  %p1647_p11 = por %p325_p10, %p71_p3 }
  0x23   : > { %2082 = sst [smem:[#allocation29_spill]] %s1645_s23  ;;  %p1126_p13 = scmp.lt.s32.totalorder %s1521_s14, 2 }
  0x24   : > { %s2083_s24 = scalar_select %p1647_p11, 1, 0 }
  0x25   : > { %s1654_s25 = sand.u32 1, %s1509_s11   ;;  %s1660_s27 = sshll.u32 %s1517_s13, 7 }
  0x26   : > { %2084 = sst [smem:[#allocation30_spill]] %s2083_s24  ;;  %s1657_s26 = sshll.u32 %s1654_s25, 3 }
  0x27   : > { %p1664_p0 = pnand %p1126_p13, %p1628_p4  ;;  %s1669_s29 = sand.u32 1, %s1521_s14  }
  0x28   : > { %s2086_s1 = sld [smem:[#allocation32_spill]]  ;;  %s368_s17 = scalar_lea.vmem [#allocation5], %s1657_s26 }
  0x29   : > { %s2085_s28 = scalar_select %p1664_p0, 1, 0 }
  0x2a   : > { %s376_s19 = sshll.u32 %s368_s17, 4  ;;  %p1687_p4 = pneg %p1664_p0  ;;  %s1679_s19 = int_to_ptr.vmem [resolvable:$true] %s376_s19 }
  0x2e   : > { %s1675_s20 = scalar_lea.hbm %s2086_s1, %s1660_s27  ;;  %s1188_s17 = scalar_lea.hbm %s2086_s1, 256 }
  0x2f   : > { %s1183_s23 = scalar_lea.hbm %s1675_s20, 128  ;;  %p1189_p7 = scmp.lt.u32.totalorder %s1675_s20, %s2086_s1 }
  0x30   : > { %p1184_p3 = scmp.ne.s32.totalorder %s1675_s20, %s1183_s23  ;;  %p1190_p10 = scmp.lt.u32.totalorder %s1188_s17, %s1183_s23 }
  0x31   : > { %p1192_p12 = scmp.lt.u32.totalorder %s1183_s23, %s1675_s20 }
  0x32   : > { %p1186_p5 = pnand %p1687_p4, %p1184_p3  ;;  %p1191_p13 = por %p1190_p10, %p1189_p7 }
  0x34   : > { %p1187_p6 = pneg %p1186_p5  ;;  %p1193_p1 = por %p1192_p12, %p1191_p13 }
  0x36   : > { %p1194_p2 = pnand %p1193_p1, %p1187_p6 }
  0x38   : > { %1197 = shalt.err (!%p1194_p2)
}
  0x39   : > { %s1198_s13 = scalar_lea.vmem %s1679_s19, 128  ;;  %s1523_s16 = smov [#allocation5]  }
  0x3a   : > { %p1199_p3 = scmp.ne.s32.totalorder %s1679_s19, %s1198_s13  ;;  %s1203_s18 = sshll.u32 %s1523_s16, 4  ;;  %s1204_s18 = int_to_ptr.vmem [resolvable:$false] %s1203_s18 }
  0x3b   : > { %s1205_s30 = scalar_lea.vmem %s1204_s18, 256  ;;  %p1206_p9 = scmp.lt.s32.totalorder %s1679_s19, %s1204_s18 }
  0x3c   : > { %p1201_p5 = pnand %p1199_p3, %p1687_p4  ;;  %p1207_p8 = scmp.lt.s32.totalorder %s1205_s30, %s1198_s13 }
  0x3e   : > { %p1202_p11 = pneg %p1201_p5  ;;  %p1208_p7 = por %p1207_p8, %p1206_p9 }
  0x40   : > { %p1209_p10 = pnand %p1208_p7, %p1202_p11 }
  0x42   : > { %1212 = shalt.err (!%p1209_p10)
}
  0x43   : > { %s2088_s23 = scalar_lea.sflag [#allocation6], %s1669_s29  ;;  %p2089_p12 = scmp.lt.s32.totalorder %s1521_s14, 3 }
  0x44   : > { %1103 = dma.hbm_to_vmem [thread:$0]  (!%p1664_p0), %s1675_s20, 128, %s1679_s19, %s2088_s23  }
  0x45   : > { %p2090_p1 = scmp.ge.s32.totalorder %s1521_s14, 1  ;;  %s2092_s3 = sld [smem:[#allocation33_spill]] }
  0x46   : > { %s406_s18 = scalar_lea.vmem [#allocation8], %s1657_s26 }
  0x47   : > { %p1716_p2 = pnand %p2090_p1, %p2089_p12  ;;  %s414_s30 = sshll.u32 %s406_s18, 4  ;;  %s415_s30 = int_to_ptr.vmem [resolvable:$true] %s414_s30 }
  0x49   : > { %s2091_s13 = scalar_select %p1716_p2, 1, 0 }
  0x4b   : > { %s1724_s16 = scalar_lea.hbm %s2092_s3, %s1660_s27  ;;  %s1218_s14 = scalar_lea.hbm %s2092_s3, 256 }
  0x4c   : > { %s1213_s20 = scalar_lea.hbm %s1724_s16, 128  ;;  %p1219_p6 = scmp.lt.u32.totalorder %s1724_s16, %s2092_s3 }
  0x4d   : > { %p1214_p8 = scmp.ne.s32.totalorder %s1724_s16, %s1213_s20  ;;  %p1220_p13 = scmp.lt.u32.totalorder %s1218_s14, %s1213_s20 }
  0x4e   : > { %p1222_p5 = scmp.lt.u32.totalorder %s1213_s20, %s1724_s16 }
  0x4f   : > { %p1216_p9 = pnand %p1214_p8, %p1687_p4  ;;  %p1221_p3 = por %p1220_p13, %p1219_p6 }
  0x51   : > { %p1217_p11 = pneg %p1216_p9  ;;  %p1223_p7 = por %p1222_p5, %p1221_p3 }
  0x53   : > { %p1224_p10 = pnand %p1223_p7, %p1217_p11 }
  0x55   : > { %1227 = shalt.err (!%p1224_p10)
}
  0x56   : > { %s1228_s18 = scalar_lea.vmem %s415_s30, 128  ;;  %s1524_s1 = smov [#allocation8]  }
  0x57   : > { %p1229_p12 = scmp.ne.s32.totalorder %s415_s30, %s1228_s18  ;;  %s1233_s9 = sshll.u32 %s1524_s1, 4  ;;  %s1234_s9 = int_to_ptr.vmem [resolvable:$false] %s1233_s9 }
  0x58   : > { %s1235_s19 = scalar_lea.vmem %s1234_s9, 256  ;;  %p1236_p9 = scmp.lt.s32.totalorder %s415_s30, %s1234_s9 }
  0x59   : > { %p1231_p1 = pnand %p1229_p12, %p1687_p4  ;;  %p1237_p2 = scmp.lt.s32.totalorder %s1235_s19, %s1228_s18 }
  0x5b   : > { %p1232_p8 = pneg %p1231_p1  ;;  %p1238_p0 = por %p1237_p2, %p1236_p9 }
  0x5d   : > { %p1239_p6 = pnand %p1238_p0, %p1232_p8 }
  0x5f   : > { %1242 = shalt.err (!%p1239_p6)
}
  0x60   : > { %p2093_p13 = scmp.ne.s32.totalorder %s2085_s28, 0  ;;  %s2094_s14 = scalar_lea.sflag [#allocation9], %s1669_s29 }
  0x61   : > { %s2095_s6 = sld [smem:[#allocation34_spill]]  ;;  %s453_s9 = scalar_lea.vmem [#allocation11], %s1657_s26 }
  0x62   : > { %1109 = dma.hbm_to_vmem [thread:$0]  (!%p2093_p13), %s1724_s16, 128, %s415_s30, %s2094_s14  }
  0x63   : > { %s461_s24 = sshll.u32 %s453_s9, 4  ;;  %s462_s24 = int_to_ptr.vmem [resolvable:$true] %s461_s24 }
  0x67   : > { %s1751_s1 = scalar_lea.hbm %s2095_s6, %s1660_s27  ;;  %s1248_s30 = scalar_lea.hbm %s2095_s6, 256 }
  0x68   : > { %s1243_s18 = scalar_lea.hbm %s1751_s1, 128  ;;  %p1249_p3 = scmp.lt.u32.totalorder %s1751_s1, %s2095_s6 }
  0x69   : > { %p1244_p0 = scmp.ne.s32.totalorder %s1751_s1, %s1243_s18  ;;  %p1250_p5 = scmp.lt.u32.totalorder %s1248_s30, %s1243_s18 }
  0x6a   : > { %p1252_p10 = scmp.lt.u32.totalorder %s1243_s18, %s1751_s1 }
  0x6b   : > { %p1246_p2 = pnand %p1244_p0, %p1687_p4  ;;  %p1251_p7 = por %p1250_p5, %p1249_p3 }
  0x6d   : > { %p1247_p11 = pneg %p1246_p2  ;;  %p1253_p12 = por %p1252_p10, %p1251_p7 }
  0x6f   : > { %p1254_p1 = pnand %p1253_p12, %p1247_p11 }
  0x71   : > { %1257 = shalt.err (!%p1254_p1)
}
  0x72   : > { %s1258_s23 = scalar_lea.vmem %s462_s24, 128  ;;  %s1525_s9 = smov [#allocation11]  }
  0x73   : > { %p1259_p8 = scmp.ne.s32.totalorder %s462_s24, %s1258_s23  ;;  %s1263_s17 = sshll.u32 %s1525_s9, 4  ;;  %s1264_s17 = int_to_ptr.vmem [resolvable:$false] %s1263_s17 }
  0x74   : > { %s1265_s19 = scalar_lea.vmem %s1264_s17, 256  ;;  %p1266_p0 = scmp.lt.s32.totalorder %s462_s24, %s1264_s17 }
  0x75   : > { %p1261_p9 = pnand %p1259_p8, %p1687_p4  ;;  %p1267_p2 = scmp.lt.s32.totalorder %s1265_s19, %s1258_s23 }
  0x77   : > { %p1262_p6 = pneg %p1261_p9  ;;  %p1268_p13 = por %p1267_p2, %p1266_p0 }
  0x79   : > { %p1269_p3 = pnand %p1268_p13, %p1262_p6 }
  0x7b   : > { %1272 = shalt.err (!%p1269_p3)
}
  0x7c   : > { %p2096_p5 = scmp.ne.s32.totalorder %s2085_s28, 0  ;;  %s2097_s18 = scalar_lea.sflag [#allocation12], %s1669_s29 }
  0x7d   : > { %s2098_s0 = sld [smem:[#allocation31_spill]]  ;;  %s349_s17 = scalar_lea.vmem [#allocation2], %s1657_s26 }
  0x7e   : > { %1115 = dma.hbm_to_vmem [thread:$0]  (!%p2096_p5), %s1751_s1, 128, %s462_s24, %s2097_s18  }
  0x7f   : > { %s357_s20 = sshll.u32 %s349_s17, 4  ;;  %s1787_s19 = scalar_lea.hbm %s2045_s2, %s1660_s27  ;;  %s1781_s20 = int_to_ptr.vmem [resolvable:$true] %s357_s20 }
  0x80   : > { %s346_s3 = scalar_lea.sflag [#allocation3], %s1654_s25 }
  0x83   : > { %s1778_s14 = scalar_lea.hbm %s2098_s0, %s1660_s27  ;;  %s1278_s16 = scalar_lea.hbm %s2098_s0, 256 }
  0x84   : > { %s1273_s1 = scalar_lea.hbm %s1778_s14, 128  ;;  %p1279_p10 = scmp.lt.u32.totalorder %s1778_s14, %s2098_s0 }
  0x85   : > { %p1274_p13 = scmp.ne.s32.totalorder %s1778_s14, %s1273_s1  ;;  %p1280_p12 = scmp.lt.u32.totalorder %s1278_s16, %s1273_s1 }
  0x86   : > { %p1282_p8 = scmp.lt.u32.totalorder %s1273_s1, %s1778_s14 }
  0x87   : > { %p1276_p11 = pnand %p1274_p13, %p1687_p4  ;;  %p1281_p1 = por %p1280_p12, %p1279_p10 }
  0x89   : > { %p1277_p7 = pneg %p1276_p11  ;;  %p1283_p9 = por %p1282_p8, %p1281_p1 }
  0x8b   : > { %p1284_p6 = pnand %p1283_p9, %p1277_p7 }
  0x8d   : > { %1287 = shalt.err (!%p1284_p6)
}
  0x8e   : > { %s1288_s17 = scalar_lea.vmem %s1781_s20, 128  ;;  %s1526_s23 = smov [#allocation2]  }
  0x8f   : > { %p1289_p0 = scmp.ne.s32.totalorder %s1781_s20, %s1288_s17  ;;  %s1293_s9 = sshll.u32 %s1526_s23, 4  ;;  %s1294_s9 = int_to_ptr.vmem [resolvable:$false] %s1293_s9 }
  0x90   : > { %s1295_s6 = scalar_lea.vmem %s1294_s9, 256  ;;  %p1296_p13 = scmp.lt.s32.totalorder %s1781_s20, %s1294_s9 }
  0x91   : > { %p1291_p2 = pnand %p1289_p0, %p1687_p4  ;;  %p1297_p11 = scmp.lt.s32.totalorder %s1295_s6, %s1288_s17 }
  0x93   : > { %p1292_p3 = pneg %p1291_p2  ;;  %p1298_p10 = por %p1297_p11, %p1296_p13 }
  0x95   : > { %p1299_p12 = pnand %p1298_p10, %p1292_p3 }
  0x97   : > { %1302 = shalt.err (!%p1299_p12)
}
  0x98   : > { %1100 = dma.hbm_to_vmem [thread:$0]  (!%p2096_p5), %s1778_s14, 128, %s1781_s20, %s346_s3  }
  0x99   : > { %s387_s1 = scalar_lea.vmem [#allocation7], %s1657_s26  ;;  %s1816_s30 = scalar_lea.hbm %s2047_s4, %s1660_s27 }
  0x9a   : > { %s395_s24 = sshll.u32 %s387_s1, 4  ;;  %s1303_s17 = scalar_lea.hbm %s1787_s19, 128  ;;  %s396_s24 = int_to_ptr.vmem [resolvable:$true] %s395_s24 }
  0x9b   : > { %p1304_p7 = scmp.ne.s32.totalorder %s1787_s19, %s1303_s17  ;;  %s1308_s6 = scalar_lea.hbm %s2045_s2, 256 }
  0x9c   : > { %p1309_p9 = scmp.lt.u32.totalorder %s1787_s19, %s2045_s2  ;;  %p1310_p6 = scmp.lt.u32.totalorder %s1308_s6, %s1303_s17 }
  0x9d   : > { %p1306_p1 = pnand %p1304_p7, %p1687_p4  ;;  %p1312_p2 = scmp.lt.u32.totalorder %s1303_s17, %s1787_s19 }
  0x9e   : > { %p1311_p0 = por %p1310_p6, %p1309_p9 }
  0x9f   : > { %p1307_p8 = pneg %p1306_p1 }
  0xa0   : > { %p1313_p3 = por %p1312_p2, %p1311_p0 }
  0xa2   : > { %p1314_p13 = pnand %p1313_p3, %p1307_p8 }
  0xa4   : > { %1317 = shalt.err (!%p1314_p13)
}
  0xa5   : > { %s1318_s3 = scalar_lea.vmem %s396_s24, 128  ;;  %s1527_s14 = smov [#allocation7]  }
  0xa6   : > { %p1319_p11 = scmp.ne.s32.totalorder %s396_s24, %s1318_s3  ;;  %s1323_s20 = sshll.u32 %s1527_s14, 4  ;;  %s1324_s20 = int_to_ptr.vmem [resolvable:$false] %s1323_s20 }
  0xa7   : > { %s1325_s1 = scalar_lea.vmem %s1324_s20, 256  ;;  %p1326_p7 = scmp.lt.s32.totalorder %s396_s24, %s1324_s20 }
  0xa8   : > { %p1321_p10 = pnand %p1319_p11, %p1687_p4  ;;  %p1327_p1 = scmp.lt.s32.totalorder %s1325_s1, %s1318_s3 }
  0xaa   : > { %p1322_p12 = pneg %p1321_p10  ;;  %p1328_p5 = por %p1327_p1, %p1326_p7 }
  0xac   : > { %p1329_p6 = pnand %p1328_p5, %p1322_p12 }
  0xae   : > { %1332 = shalt.err (!%p1329_p6)
}
  0xaf   : > { %p2099_p9 = scmp.ne.s32.totalorder %s2085_s28, 0  ;;  %s2100_s0 = scalar_lea.sflag [#allocation6], %s1669_s29 }
  0xb0   : > { %s425_s22 = scalar_lea.vmem [#allocation10], %s1657_s26  ;;  %s1842_s23 = scalar_lea.hbm %s2050_s7, %s1660_s27 }
  0xb1   : > { %1106 = dma.hbm_to_vmem [thread:$0]  (!%p2099_p9), %s1787_s19, 128, %s396_s24, %s2100_s0  }
  0xb2   : > { %s433_s18 = sshll.u32 %s425_s22, 4  ;;  %s1333_s9 = scalar_lea.hbm %s1816_s30, 128  ;;  %s434_s18 = int_to_ptr.vmem [resolvable:$true] %s433_s18 }
  0xb3   : > { %p1334_p5 = scmp.ne.s32.totalorder %s1816_s30, %s1333_s9  ;;  %s1338_s14 = scalar_lea.hbm %s2047_s4, 256 }
  0xb4   : > { %p1339_p2 = scmp.lt.u32.totalorder %s1816_s30, %s2047_s4  ;;  %p1340_p3 = scmp.lt.u32.totalorder %s1338_s14, %s1333_s9 }
  0xb5   : > { %p1336_p8 = pnand %p1334_p5, %p1687_p4  ;;  %p1342_p11 = scmp.lt.u32.totalorder %s1333_s9, %s1816_s30 }
  0xb6   : > { %p1341_p13 = por %p1340_p3, %p1339_p2 }
  0xb7   : > { %p1337_p0 = pneg %p1336_p8 }
  0xb8   : > { %p1343_p10 = por %p1342_p11, %p1341_p13 }
  0xba   : > { %p1344_p12 = pnand %p1343_p10, %p1337_p0 }
  0xbc   : > { %1347 = shalt.err (!%p1344_p12)
}
  0xbd   : > { %s1348_s19 = scalar_lea.vmem %s434_s18, 128  ;;  %s1528_s24 = smov [#allocation10]  }
  0xbe   : > { %p1349_p7 = scmp.ne.s32.totalorder %s434_s18, %s1348_s19  ;;  %s1353_s0 = sshll.u32 %s1528_s24, 4  ;;  %s1354_s0 = int_to_ptr.vmem [resolvable:$false] %s1353_s0 }
  0xbf   : > { %s1355_s22 = scalar_lea.vmem %s1354_s0, 256  ;;  %p1356_p5 = scmp.lt.s32.totalorder %s434_s18, %s1354_s0 }
  0xc0   : > { %p1351_p1 = pnand %p1349_p7, %p1687_p4  ;;  %p1357_p8 = scmp.lt.s32.totalorder %s1355_s22, %s1348_s19 }
  0xc2   : > { %p1352_p6 = pneg %p1351_p1  ;;  %p1358_p9 = por %p1357_p8, %p1356_p5 }
  0xc4   : > { %p1359_p2 = pnand %p1358_p9, %p1352_p6 }
  0xc6   : > { %1362 = shalt.err (!%p1359_p2)
}
  0xc7   : > { %p2101_p3 = scmp.ne.s32.totalorder %s2085_s28, 0  ;;  %s2102_s16 = scalar_lea.sflag [#allocation9], %s1669_s29 }
  0xc8   : > { %s472_s17 = scalar_lea.vmem [#allocation13], %s1657_s26  ;;  %s1363_s6 = scalar_lea.hbm %s1842_s23, 128 }
  0xc9   : > { %1112 = dma.hbm_to_vmem [thread:$0]  (!%p2101_p3), %s1816_s30, 128, %s434_s18, %s2102_s16  }
  0xca   : > { %s480_s9 = sshll.u32 %s472_s17, 4  ;;  %p1364_p0 = scmp.ne.s32.totalorder %s1842_s23, %s1363_s6  ;;  %s481_s9 = int_to_ptr.vmem [resolvable:$true] %s480_s9 }
  0xcb   : > { %s1368_s20 = scalar_lea.hbm %s2050_s7, 256  ;;  %p1369_p11 = scmp.lt.u32.totalorder %s1842_s23, %s2050_s7 }
  0xcc   : > { %p1366_p9 = pnand %p1364_p0, %p1687_p4  ;;  %p1370_p10 = scmp.lt.u32.totalorder %s1368_s20, %s1363_s6 }
  0xcd   : > { %p1372_p7 = scmp.lt.u32.totalorder %s1363_s6, %s1842_s23 }
  0xce   : > { %p1367_p13 = pneg %p1366_p9  ;;  %p1371_p12 = por %p1370_p10, %p1369_p11 }
  0xd0   : > { %p1373_p1 = por %p1372_p7, %p1371_p12 }
  0xd2   : > { %p1374_p6 = pnand %p1373_p1, %p1367_p13 }
  0xd4   : > { %1377 = shalt.err (!%p1374_p6)
}
  0xd5   : > { %s1378_s30 = scalar_lea.vmem %s481_s9, 128  ;;  %s1529_s18 = smov [#allocation13]  }
  0xd6   : > { %p1379_p5 = scmp.ne.s32.totalorder %s481_s9, %s1378_s30  ;;  %s1383_s24 = sshll.u32 %s1529_s18, 4  ;;  %s1384_s24 = int_to_ptr.vmem [resolvable:$false] %s1383_s24 }
  0xd7   : > { %s1385_s0 = scalar_lea.vmem %s1384_s24, 256  ;;  %p1386_p0 = scmp.lt.s32.totalorder %s481_s9, %s1384_s24 }
  0xd8   : > { %p1381_p8 = pnand %p1379_p5, %p1687_p4  ;;  %p1387_p9 = scmp.lt.s32.totalorder %s1385_s0, %s1378_s30 }
  0xda   : > { %p1382_p2 = pneg %p1381_p8  ;;  %p1388_p3 = por %p1387_p9, %p1386_p0 }
  0xdc   : > { %p1389_p10 = pnand %p1388_p3, %p1382_p2 }
  0xde   : > { %1392 = shalt.err (!%p1389_p10)
}
  0xdf   : > { %p2103_p11 = scmp.ne.s32.totalorder %s2085_s28, 0  ;;  %s2104_s22 = scalar_lea.sflag [#allocation12], %s1669_s29 }
  0xe0   : > { %s1887_s6 = scalar_lea.hbm %s2051_s8, %s1660_s27  ;;  %s491_s3 = scalar_lea.vmem [#allocation14], %s1657_s26 }
  0xe1   : > { %1118 = dma.hbm_to_vmem [thread:$0]  (!%p2103_p11), %s1842_s23, 128, %s481_s9, %s2104_s22  }
  0xe2   : > { %s499_s14 = sshll.u32 %s491_s3, 4  ;;  %s488_s20 = scalar_lea.sflag [#allocation15], %s1654_s25  ;;  %s500_s14 = int_to_ptr.vmem [resolvable:$true] %s499_s14 }
  0xe3   : > { %s1393_s29 = scalar_lea.hbm %s1887_s6, 128  ;;  %s1398_s9 = scalar_lea.hbm %s2051_s8, 256 }
  0xe4   : > { %p1394_p3 = scmp.ne.s32.totalorder %s1887_s6, %s1393_s29  ;;  %p1399_p7 = scmp.lt.u32.totalorder %s1887_s6, %s2051_s8 }
  0xe5   : > { %p1400_p1 = scmp.lt.u32.totalorder %s1398_s9, %s1393_s29  ;;  %p1402_p5 = scmp.lt.u32.totalorder %s1393_s29, %s1887_s6 }
  0xe6   : > { %p1396_p13 = pnand %p1394_p3, %p1687_p4 }
  0xe7   : > { %p1401_p6 = por %p1400_p1, %p1399_p7 }
  0xe8   : > { %p1397_p12 = pneg %p1396_p13 }
  0xe9   : > { %p1403_p8 = por %p1402_p5, %p1401_p6 }
  0xeb   : > { %p1404_p2 = pnand %p1403_p8, %p1397_p12 }
  0xed   : > { %1407 = shalt.err (!%p1404_p2)
}
  0xee   : > { %s1408_s25 = scalar_lea.vmem %s500_s14, 128  ;;  %s1530_s26 = smov [#allocation14]  }
  0xef   : > { %p1409_p0 = scmp.ne.s32.totalorder %s500_s14, %s1408_s25  ;;  %s1413_s30 = sshll.u32 %s1530_s26, 4  ;;  %s1414_s30 = int_to_ptr.vmem [resolvable:$false] %s1413_s30 }
  0xf0   : > { %s1415_s18 = scalar_lea.vmem %s1414_s30, 256  ;;  %p1416_p3 = scmp.lt.s32.totalorder %s500_s14, %s1414_s30 }
  0xf1   : > { %p1411_p9 = pnand %p1409_p0, %p1687_p4  ;;  %p1417_p13 = scmp.lt.s32.totalorder %s1415_s18, %s1408_s25 }
  0xf3   : > { %p1412_p10 = pneg %p1411_p9  ;;  %p1418_p11 = por %p1417_p13, %p1416_p3 }
  0xf5   : > { %p1419_p1 = pnand %p1418_p11, %p1412_p10 }
  0xf7   : > { %1422 = shalt.err (!%p1419_p1)
}
  0xf8   : > { %p2105_p7 = scmp.ne.s32.totalorder %s2085_s28, 0  ;;  %p2106_p12 = scmp.ne.s32.totalorder %s2091_s13, 0 }
  0xf9   : > { %s1911_s11 = sand.u32 (!%p2106_p12), 1, %s1505_s10   ;;  %p2107_p4 = scmp.ne.s32.totalorder (!%p2106_p12), %s2079_s21, 0 }
  0xfa   : > { %1121 = dma.hbm_to_vmem [thread:$0]  (!%p2105_p7), %s1887_s6, 128, %s500_s14, %s488_s20  }
  0xfb   : > { %508 = sbr.rel (%p2106_p12) target bundleno = 333 (0x14d), region = 56  ;;  %s1914_s24 = sshll.u32 (!%p2106_p12), %s1911_s11, 3 }
  0xfc   : > { %s511_s0 = scalar_lea.sflag (!%p2106_p12), [#allocation3], %s1911_s11  ;;  %s514_s22 = scalar_lea.vmem (!%p2106_p12), [#allocation2], %s1914_s24 }
 0x102   : > { %1476 = dma.done.wait (%p2107_p4), %s511_s0, 128  }
 0x103   : > { %1478 = vsyncadd (%p2107_p4), %s511_s0, 4294967168  ;;  %s519_s28 = sand.u32 1, %s1616_s15   ;;  %s523_s16 = scalar_lea.vmem [#allocation5], %s1914_s24 }
 0x104   : > { %s520_s13 = scalar_lea.sflag [#allocation6], %s519_s28 }
 0x105   : > { %1480 = dma.done.wait (%p2107_p4), %s520_s13, 256  }
 0x106   : > { %1482 = vsyncadd (%p2107_p4), %s520_s13, 4294967040  ;;  %s532_s17 = scalar_lea.vmem [#allocation7], %s1914_s24  ;;  %s538_s6 = scalar_lea.sflag [#allocation9], %s519_s28 }
 0x107   : > { %s541_s3 = scalar_lea.vmem [#allocation8], %s1914_s24 }
 0x108   : > { %1484 = dma.done.wait (%p2107_p4), %s538_s6, 256  }
 0x109   : > { %1486 = vsyncadd (%p2107_p4), %s538_s6, 4294967040  ;;  %s550_s15 = scalar_lea.vmem [#allocation10], %s1914_s24  ;;  %s556_s14 = scalar_lea.sflag [#allocation12], %s519_s28 }
 0x10a   : > { %s559_s20 = scalar_lea.vmem [#allocation11], %s1914_s24 }
 0x10b   : > { %1488 = dma.done.wait (%p2107_p4), %s556_s14, 256  }
 0x10c   : > { %1490 = vsyncadd (%p2107_p4), %s556_s14, 4294967040  ;;  %s568_s29 = scalar_lea.vmem [#allocation13], %s1914_s24  ;;  %s574_s1 = scalar_lea.sflag [#allocation15], %s1911_s11 }
 0x10d   : > { %s577_s23 = scalar_lea.vmem [#allocation14], %s1914_s24 }
 0x10e   : > { %1492 = dma.done.wait (%p2107_p4), %s574_s1, 128  }
 0x10f   : > { %1494 = vsyncadd (%p2107_p4), %s574_s1, 4294967168  ;;  %s1078_s9 = smul.u32 6, %s1911_s11  ;;  %p658_p11 = scmp.lt.s32.totalorder %s1513_s12, 1  ;;  %v1531_v0 = vmov 0.0   ;;  %v677_v1 = vld [vmem:[%s514_s22] sm:$0xff]  ;;  %v678_v2 = vld [vmem:[%s523_s16] sm:$0xff] }
 0x110   : > { %v687_v3 = vld [vmem:[%s550_s15] sm:$0xff]  ;;  %v679_v4 = vsub.f32 %v677_v1, %v678_v2  ;;  %v690_v6 = vld [vmem:[%s541_s3] sm:$0xff]  ;;  %s2108_s18 = sld [smem:[#allocation28_spill]]  ;;  %s1077_s24 = smul.u32 96, %s1513_s12 }
 0x111   : > { %s1949_s19 = scalar_lea.vmem [#allocation16], %s1078_s9  ;;  %v689_v5 = vld [vmem:[%s532_s17] sm:$0xff]  ;;  %v700_v7 = vrot.slane %v687_v3, 4  ;;  %v714_v11 = vld [vmem:[%s559_s20] sm:$0xff]  ;;  %vm688_vm0 = vcmp.gt.f32.partialorder %v687_v3, 0.0  ;;  %s2109_s13 = sld [smem:[#allocation35_spill]] }
 0x112   : > { %671 = vst [vmem:[%s1949_s19] sm:$0x1] %v1531_v0  ;;  %672 = vst [vmem:[%s1949_s19 + $0x1] sm:$0x1] %v1531_v0  ;;  %s659_s21 = scalar_select %p658_p11, %s1513_s12, 1  ;;  %v691_v9 = vsub.f32 %v689_v5, %v690_v6  ;;  %v680_v12 = vand.u32 2147483647, %v679_v4 }
 0x113   : > { %673 = vst [vmem:[%s1949_s19 + $0x2] sm:$0x1] %v1531_v0  ;;  %674 = vst [vmem:[%s1949_s19 + $0x3] sm:$0x1] %v1531_v0  ;;  %v701_v13 = vadd.f32 %v700_v7, %v687_v3  ;;  %v713_v18 = vld [vmem:[%s577_s23] sm:$0xff]  ;;  %v715_v19 = vmax.f32 %v714_v11, 0.0 }
 0x114   : > { %675 = vst [vmem:[%s1949_s19 + $0x4] sm:$0x1] %v1531_v0  ;;  %676 = vst [vmem:[%s1949_s19 + $0x5] sm:$0x1] %v1531_v0  ;;  %s1063_s27 = sshll.u32 %s659_s21, 3  ;;  %v681_v16 = vrot.slane %v680_v12, 4 }
 0x115   : > { %s661_s30 = scalar_lea.vmem %s2048_s5, %s1063_s27  ;;  %v692_v14 = vand.u32 2147483647, %v691_v9  ;;  %v702_v17 = vrot.slane %v701_v13, 2  ;;  %v738_v22 = vrot.slane %v713_v18, 4  ;;  %v716_v26 = vmin.f32 %v715_v19, 1.0  ;;  %v717_v58 = vld [vmem:[%s568_s29] sm:$0xff] }
 0x116   : > { %v706_v8 = vld [vmem:[%s661_s30] sm:$0xff]  ;;  %v682_v23 = vadd.f32 %v681_v16, %v680_v12  ;;  %v727_v63 = vsub.f32 1.0, %v717_v58  ;;  %vm725_vm1 = vcmp.gt.f32.partialorder %v713_v18, 0.0  ;;  %s781_s0 = sshll.u32 %s1949_s19, 4  ;;  %s768_s6 = scalar_lea.sflag [#allocation4], %s1911_s11  ;;  %s1993_s0 = int_to_ptr.vmem [resolvable:$true] %s781_s0 }
 0x117   : > { %v707_v10 = vrot.slane %v706_v8, 4  ;;  %v693_v20 = vsel %vm688_vm0, %v692_v14, 0.0  ;;  %v703_v25 = vadd.f32 %v702_v17, %v701_v13  ;;  %v739_v28 = vadd.f32 %v738_v22, %v713_v18  ;;  %s2110_s16 = smov %s2109_s13  ;;  %s1991_s17 = scalar_lea.hbm %s2109_s13, %s1077_s24 }
 0x118   : > { %v694_v24 = vrot.slane %v693_v20, 4  ;;  %v683_v29 = vrot.slane %v682_v23, 2  ;;  %1179 = vlog2.f32 %v716_v26  ;;  %v721_v34 = vsub.f32 1.0, %v716_v26  ;;  %s1423_s3 = scalar_lea.vmem %s1993_s0, 96  ;;  %p2111_p5 = scmp.ne.s32.totalorder %s2108_s18, 0 }
 0x119   : > { %v708_v15 = vadd.f32 %v707_v10, %v706_v8  ;;  %v704_v31 = vrot.slane %v703_v25, 1  ;;  %v740_v35 = vrot.slane %v739_v28, 2  ;;  %v744_v45 = vld [vmem:[%s1949_s19] sm:$0x1]  ;;  %v1064_v51 = vld [vmem:[%s1949_s19 + $0x1] sm:$0x1]  ;;  %p1424_p6 = scmp.ne.s32.totalorder %s1993_s0, %s1423_s3 }
 0x11a   : > { %v695_v30 = vadd.f32 %v694_v24, %v693_v20  ;;  %v1066_v32 = vld [vmem:[%s1949_s19 + $0x2] sm:$0x1]  ;;  %v684_v36 = vadd.f32 %v683_v29, %v682_v23  ;;  %v1068_v39 = vld [vmem:[%s1949_s19 + $0x3] sm:$0x1]  ;;  %1181 = vlog2.f32 %v721_v34  ;;  %s1532_s12 = smov [#allocation16]  }
 0x11b   : > { %v709_v21 = vrot.slane %v708_v15, 2  ;;  %v705_v38 = vadd.f32 %v704_v31, %v703_v25  ;;  %v741_v41 = vadd.f32 %v740_v35, %v739_v28  ;;  %v1072_v50 = vld [vmem:[%s1949_s19 + $0x5] sm:$0x1]  ;;  %v1070_v11 = vld [vmem:[%s1949_s19 + $0x4] sm:$0x1]  ;;  %p1425_p8 = pnand %p1424_p6, %p2111_p5  ;;  %s1427_s15 = sshll.u32 %s1532_s12, 4  ;;  %s1428_s15 = int_to_ptr.vmem [resolvable:$false] %s1427_s15 }
 0x11c   : > { %v696_v37 = vrot.slane %v695_v30, 2  ;;  %v685_v42 = vrot.slane %v684_v36, 1  ;;  %s1429_s14 = scalar_lea.vmem %s1428_s15, 192  ;;  %p1430_p0 = scmp.lt.s32.totalorder %s1993_s0, %s1428_s15 }
 0x11d   : > { %v710_v27 = vadd.f32 %v709_v21, %v708_v15  ;;  %v753_v44 = vadd.f32 %v1066_v32, %v705_v38  ;;  %v742_v47 = vrot.slane %v741_v41, 1  ;;  %p1426_p2 = pneg %p1425_p8  ;;  %p1431_p9 = scmp.lt.s32.totalorder %s1429_s14, %s1423_s3 }
 0x11e   : > { %v697_v43 = vadd.f32 %v696_v37, %v695_v30  ;;  %v686_v48 = vadd.f32 %v685_v42, %v684_v36 }
 0x11f   : > { %v711_v33 = vrot.slane %v710_v27, 1  ;;  %1067 = vst [vmem:[%s1949_s19 + $0x2] sm:$0x1] %v753_v44  ;;  %v743_v52 = vadd.f32 %v742_v47, %v741_v41  ;;  %p1432_p10 = por %p1431_p9, %p1430_p0 }
 0x120   : > { %v698_v49 = vrot.slane %v697_v43, 1  ;;  %v745_v53 = vadd.f32 %v744_v45, %v686_v48 }
 0x121   : > { %v712_v40 = vadd.f32 %v711_v33, %v710_v27  ;;  %v765_v55 = vadd.f32 %v1072_v50, %v743_v52  ;;  %p1433_p3 = pnand %p1432_p10, %p1426_p2 }
 0x122   : > { %v699_v54 = vadd.f32 %v698_v49, %v697_v43  ;;  %v1180_v56 = vpop.eup %1179  ;;  %746 = vst [vmem:[%s1949_s19] sm:$0x1] %v745_v53 }
 0x123   : > { %v757_v46 = vadd.f32 %v1068_v39, %v712_v40  ;;  %v719_v59 = vmul.f32 0.6931472, %v1180_v56  ;;  %1073 = vst [vmem:[%s1949_s19 + $0x5] sm:$0x1] %v765_v55 }
 0x124   : > { %v749_v57 = vadd.f32 %v1064_v51, %v699_v54  ;;  %v1182_v60 = vpop.eup %1181 }
 0x125   : > { %1069 = vst [vmem:[%s1949_s19 + $0x3] sm:$0x1] %v757_v46  ;;  %v720_v61 = vmax.f32 %v719_v59, -100.0  ;;  %v723_v62 = vmul.f32 0.6931472, %v1182_v60 }
 0x126   : > { %1065 = vst [vmem:[%s1949_s19 + $0x1] sm:$0x1] %v749_v57 }
 0x127   : > { %v724_v0 = vmax.f32 %v723_v62, -100.0  ;;  %v726_v1 = vmul.f32 %v720_v61, %v717_v58 }
 0x129   : > { %v728_v2 = vmul.f32 %v727_v63, %v724_v0 }
 0x12b   : > { %v729_v3 = vadd.f32 %v728_v2, %v726_v1 }
 0x12d   : > { %v730_v4 = vsub.f32 0.0, %v729_v3 }
 0x12f   : > { %v731_v5 = vsel %vm725_vm1, %v730_v4, 0.0 }
 0x130   : > { %v732_v6 = vrot.slane %v731_v5, 4 }
 0x132   : > { %v733_v7 = vadd.f32 %v732_v6, %v731_v5 }
 0x134   : > { %v734_v8 = vrot.slane %v733_v7, 2 }
 0x136   : > { %v735_v9 = vadd.f32 %v734_v8, %v733_v7 }
 0x138   : > { %v736_v10 = vrot.slane %v735_v9, 1 }
 0x13a   : > { %v737_v12 = vadd.f32 %v736_v10, %v735_v9 }
 0x13c   : > { %v761_v13 = vadd.f32 %v1070_v11, %v737_v12 }
 0x13e   : > { %1071 = vst [vmem:[%s1949_s19 + $0x4] sm:$0x1] %v761_v13 }
 0x13f   : > { %1436 = shalt.err (!%p1433_p3)
}
 0x140   : > { %s1437_s20 = scalar_lea.hbm %s1991_s17, 96  ;;  %s1441_s23 = scalar_lea.hbm %s2110_s16, 192 }
 0x141   : > { %p1438_p13 = scmp.ne.s32.totalorder %s1991_s17, %s1437_s20  ;;  %p1442_p12 = scmp.lt.u32.totalorder %s1991_s17, %s2110_s16 }
 0x142   : > { %p1443_p4 = scmp.lt.u32.totalorder %s1441_s23, %s1437_s20  ;;  %p1445_p6 = scmp.lt.u32.totalorder %s1437_s20, %s1991_s17 }
 0x143   : > { %p1439_p1 = pnand %p1438_p13, %p2111_p5 }
 0x144   : > { %p1444_p11 = por %p1443_p4, %p1442_p12 }
 0x145   : > { %p1440_p7 = pneg %p1439_p1 }
 0x146   : > { %p1446_p8 = por %p1445_p6, %p1444_p11 }
 0x148   : > { %p1447_p2 = pnand %p1446_p8, %p1440_p7 }
 0x14a   : > { %1450 = shalt.err (!%p1447_p2)
}
 0x14b   : > { %s1533_s21 = smov 16   ;;  %s1534_s27 = smov 1  }
 0x14c   : > { %1095 = dma.vmem_to_hbm [thread:$0]  (%p2111_p5), %s1993_s0, 96, %s1991_s17, %s768_s6, %s1533_s21, %s1533_s21, %s1534_s27  }
 0x14d PF: > { %s2112_s25 = sld [smem:[#allocation23_spill]]  ;;  %s2113_s26 = sld [smem:[#allocation30_spill]] }
 0x14e   : > { %s2114_s30 = sld [smem:[#allocation26_spill]] }
 0x153   : > { %s796_s24 = sand.u32 1, %s2112_s25   ;;  %p2115_p0 = scmp.ne.s32.totalorder %s2113_s26, 0 }
 0x154   : > { %p2116_p9 = scmp.ge.s32.totalorder %s2114_s30, 2  ;;  %s797_s22 = scalar_lea.sflag [#allocation4], %s796_s24 }
 0x156   : > { %p1123_p10 = pnand %p2116_p9, %p2115_p0 }
 0x158   : > { %1496 = dma.done.wait (!%p1123_p10), %s797_s22, 96  }
 0x159   : > { %1498 = vsyncadd (!%p1123_p10), %s797_s22, 4294967200  ;;  %s37_s14 = sadd.s32 1, %s2114_s30   ;;  %s2117_s28 = sld [smem:[#allocation24_spill]] }
 0x15a   : > { %p34_p3 = scmp.ge.s32.totalorder %s37_s14, 4   ;;  %s2118_s11 = sld [smem:[#allocation29_spill]] }
 0x15b   : > { %s2119_s12 = sld [smem:[#allocation25_spill]]  ;;  %s2120_s13 = sld [smem:[#allocation27_spill]] }
 0x15c   : > { %s2121_s30 = smov %s1505_s10  ;;  %36 = sbr.rel (!%p34_p3) target bundleno = 20 (0x14), region = 198 }
 0x15f   : > { %s2122_s10 = smov %s2117_s28 }
 0x163   :  { %802 = vsyncpa [#allocation3], 1 }
 0x164   :  { %804 = vsyncpa [#allocation3 + $0x1], 1 }
 0x165   :  { %805 = vsyncpa [#allocation6], 1 }
 0x166   :  { %807 = vsyncpa [#allocation6 + $0x1], 1 }
 0x167   :  { %808 = vsyncpa [#allocation9], 1 }
 0x168   :  { %810 = vsyncpa [#allocation9 + $0x1], 1 }
 0x169   :  { %811 = vsyncpa [#allocation12], 1 }
 0x16a   :  { %813 = vsyncpa [#allocation12 + $0x1], 1 }
 0x16b   :  { %814 = vsyncpa [#allocation15], 1 }
 0x16c   :  { %816 = vsyncpa [#allocation15 + $0x1], 1 }
 0x16d   :  { %817 = vsyncpa [#allocation4], 1 }
 0x16e   :  { %819 = vsyncpa [#allocation4 + $0x1], 1 }

</bundles_post_ra>
